<compile_context>
chip_gen: v7x
topology: tpu7x:2x2x1
jax: 0.10.0
libtpu: 0.0.40
codegen_flags: <defaults>
</compile_context>

<pallas_src>
import math
import functools

import jax
import jax.numpy as jnp
from jax import lax
from jax.experimental import pallas as pl
from jax.experimental.pallas import tpu as pltpu


_VMEM_LIMIT = 64 * 1024 * 1024          # scoped-VMEM cap; <= physical on v5e/v6e/v7x
_FUSED_VMEM_BUDGET = 40 * 1024 * 1024   # conservative budget for the fused path


# -----------------------------------------------------------------------------
# Shared per-head attention body (operates on VMEM values, not refs)
#   q_all/k_all/v_all : [S, nh*D]   mask : [1, S] (additive, f32)
#   probs_ref (optional) : [nh, S, S]
#   returns context [S, nh*D] in f32
# -----------------------------------------------------------------------------
def _attention_heads(q_all, k_all, v_all, mask, probs_ref, *, num_heads,
                     head_dim, scale, compute_dtype, approx_recip):
    ctx_parts = []
    for h in range(num_heads):                      # small static unroll
        lo = h * head_dim
        qh = (q_all[:, lo:lo + head_dim] * scale).astype(compute_dtype)
        kh = k_all[:, lo:lo + head_dim].astype(compute_dtype)
        vh = v_all[:, lo:lo + head_dim].astype(compute_dtype)
        # Q @ K^T without materialising K^T: contract last dims of both.
        s = lax.dot_general(qh, kh, (((1,), (1,)), ((), ())),
                            preferred_element_type=jnp.float32)
        s = s + mask                                 # [S,S] + [1,S] broadcast
        m = jnp.max(s, axis=-1, keepdims=True)
        e = jnp.exp(s - m)
        denom = jnp.sum(e, axis=-1, keepdims=True)
        p = e * pl.reciprocal(denom, approx=approx_recip)
        if probs_ref is not None:
            probs_ref[h] = p.astype(probs_ref.dtype)
        ctx_parts.append(jnp.dot(p.astype(compute_dtype), vh,
                                 preferred_element_type=jnp.float32))
    # Single lane-dense [S, nh*D] result.
    return jnp.concatenate(ctx_parts, axis=-1)


# -----------------------------------------------------------------------------
# Fused kernel (primary path): QKV projection + all-head attention, one batch
# element per grid step.
#   x:[S,H]  wqkv:[H,3H]  bqkv:[1,3H]  mask:[1,S]
#   outputs: ctx [S,H], optional probs [nH,S,S]
# -----------------------------------------------------------------------------
def fused_attn_kernel(x_ref, w_ref, b_ref, mask_ref, ctx_ref, probs_ref=None, *,
                      hidden_size, num_heads, head_dim, scale, compute_dtype,
                      approx_recip):
    x = x_ref[...].astype(compute_dtype)             # cast MXU operand
    qkv = jnp.dot(x, w_ref[...],
                  preferred_element_type=jnp.float32) + b_ref[...]   # [S,3H] f32
    mask = mask_ref[...].astype(jnp.float32)          # [1,S]
    H = hidden_size
    ctx = _attention_heads(qkv[:, :H], qkv[:, H:2 * H], qkv[:, 2 * H:],
                           mask, probs_ref, num_heads=num_heads,
                           head_dim=head_dim, scale=scale,
                           compute_dtype=compute_dtype,
                           approx_recip=approx_recip)
    ctx_ref[...] = ctx.astype(ctx_ref.dtype)


def _fused_vmem_bytes(seq, hidden, num_heads, in_bytes, cdt_bytes, out_attn):
    est = 2 * seq * hidden * in_bytes             # x block, double-buffered
    est += 2 * hidden * 3 * hidden * cdt_bytes    # packed weights (resident, 2 bufs)
    est += 2 * 3 * hidden * 4                     # bias
    est += seq * 3 * hidden * 4                   # qkv f32 intermediate
    est += 6 * seq * seq * 4                      # per-head softmax temporaries
    est += seq * hidden * 4                       # context accumulation
    est += 2 * seq * hidden * 4                   # ctx out, double-buffered
    if out_attn:
        est += 2 * num_heads * seq * seq * 4      # probs out, double-buffered
    return est


def fused_self_attention(x2d, wqkv, bqkv, mask3, batch, seq, num_heads,
                         head_dim, out_dtype, output_attentions, compute_dtype):
    H = num_heads * head_dim
    approx = jnp.dtype(compute_dtype) != jnp.float32
    kernel = functools.partial(
        fused_attn_kernel, hidden_size=H, num_heads=num_heads,
        head_dim=head_dim, scale=1.0 / math.sqrt(head_dim),
        compute_dtype=compute_dtype, approx_recip=approx)

    x_spec = pl.BlockSpec((seq, H), lambda b: (b, 0))
    w_spec = pl.BlockSpec((H, 3 * H), lambda b: (0, 0))    # resident weights
    b_spec = pl.BlockSpec((1, 3 * H), lambda b: (0, 0))    # resident bias
    mask_spec = pl.BlockSpec((None, 1, seq), lambda b: (b, 0, 0))
    ctx_spec = pl.BlockSpec((seq, H), lambda b: (b, 0))
    ctx_sd = jax.ShapeDtypeStruct((batch * seq, H), out_dtype)
    cparams = pltpu.CompilerParams(dimension_semantics=("parallel",),
                                   vmem_limit_bytes=_VMEM_LIMIT)

    if output_attentions:
        probs_spec = pl.BlockSpec((None, num_heads, seq, seq),
                                  lambda b: (b, 0, 0, 0))
        ctx2d, probs = pl.pallas_call(
            kernel,
            out_shape=(ctx_sd,
                       jax.ShapeDtypeStruct((batch, num_heads, seq, seq),
                                            jnp.float32)),
            grid=(batch,),
            in_specs=[x_spec, w_spec, b_spec, mask_spec],
            out_specs=(ctx_spec, probs_spec),
            compiler_params=cparams,
        )(x2d, wqkv, bqkv, mask3)
        return ctx2d, probs

    ctx2d = pl.pallas_call(
        kernel,
        out_shape=ctx_sd,
        grid=(batch,),
        in_specs=[x_spec, w_spec, b_spec, mask_spec],
        out_specs=ctx_spec,
        compiler_params=cparams,
    )(x2d, wqkv, bqkv, mask3)
    return ctx2d, None


# -----------------------------------------------------------------------------
# Fallback path (large working sets): two kernels.
# -----------------------------------------------------------------------------
def _pick_row_tile(m):
    """Largest row tile <= 512 that divides M (keeps sublane dim 8-aligned)."""
    for tm in (512, 256, 128, 64, 32, 16, 8):
        if m % tm == 0:
            return tm
    return m


def _pick_heads_per_block(num_heads, head_dim, seq_len):
    """Heads per attention grid step: lane-dense (hb*D % 128 == 0, or full H)
    and a bounded per-step probs block so double-buffered tiles fit v7x VMEM."""
    full = num_heads * head_dim
    probs_budget = 8 * 1024 * 1024  # bytes for the [hb, S, S] f32 probs block
    for hb in range(num_heads, 0, -1):
        if num_heads % hb:
            continue
        lane_dense = (hb * head_dim) % 128 == 0 or hb * head_dim == full
        fits = hb * seq_len * seq_len * 4 <= probs_budget
        if lane_dense and fits:
            return hb
    # TODO(synk): for very long sequences also tile the query axis instead of
    #             falling back to full-width head blocks.
    return num_heads


# Kernel A: fused Q/K/V projection, tiled over M = B*S.
def qkv_kernel(x_ref, w_ref, b_ref, q_ref, k_ref, v_ref, *, hidden_size,
               compute_dtype):
    x = x_ref[...].astype(compute_dtype)
    y = jnp.dot(x, w_ref[...], preferred_element_type=jnp.float32) + b_ref[...]
    q_ref[...] = y[:, :hidden_size].astype(q_ref.dtype)
    k_ref[...] = y[:, hidden_size:2 * hidden_size].astype(k_ref.dtype)
    v_ref[...] = y[:, 2 * hidden_size:].astype(v_ref.dtype)


def qkv_projection(x2d, wqkv, bqkv, compute_dtype):
    M, H = x2d.shape
    tm = _pick_row_tile(M)
    kernel = functools.partial(qkv_kernel, hidden_size=H,
                               compute_dtype=compute_dtype)
    row_spec = pl.BlockSpec((tm, H), lambda i: (i, 0))
    out_sd = jax.ShapeDtypeStruct((M, H), compute_dtype)
    return pl.pallas_call(
        kernel,
        out_shape=(out_sd, out_sd, out_sd),
        grid=(M // tm,),
        in_specs=[row_spec,
                  pl.BlockSpec((H, 3 * H), lambda i: (0, 0)),   # resident weights
                  pl.BlockSpec((1, 3 * H), lambda i: (0, 0))],  # resident bias
        out_specs=(row_spec, row_spec, row_spec),
        compiler_params=pltpu.CompilerParams(
            dimension_semantics=("parallel",),
            vmem_limit_bytes=_VMEM_LIMIT),
    )(x2d, wqkv, bqkv)


# Kernel B: attention, grid = (B, nH // hb); q/k/v blocks [S, hb*D] sliced
# straight out of the flat [B*S, H] arrays.
def attn_block_kernel(q_ref, k_ref, v_ref, mask_ref, ctx_ref, probs_ref=None, *,
                      heads_per_block, head_dim, scale, compute_dtype,
                      approx_recip):
    mask = mask_ref[...].astype(jnp.float32)
    ctx = _attention_heads(q_ref[...], k_ref[...], v_ref[...], mask, probs_ref,
                           num_heads=heads_per_block, head_dim=head_dim,
                           scale=scale, compute_dtype=compute_dtype,
                           approx_recip=approx_recip)
    ctx_ref[...] = ctx.astype(ctx_ref.dtype)


def multihead_attention(q2d, k2d, v2d, mask3, batch, seq, num_heads, head_dim,
                        out_dtype, output_attentions):
    H = num_heads * head_dim
    hb = _pick_heads_per_block(num_heads, head_dim, seq)
    approx = q2d.dtype != jnp.float32
    kernel = functools.partial(
        attn_block_kernel, heads_per_block=hb, head_dim=head_dim,
        scale=1.0 / math.sqrt(head_dim), compute_dtype=q2d.dtype,
        approx_recip=approx)

    qkv_spec = pl.BlockSpec((seq, hb * head_dim), lambda b, h: (b, h))
    ctx_spec = pl.BlockSpec((seq, hb * head_dim), lambda b, h: (b, h))
    mask_spec = pl.BlockSpec((None, 1, seq), lambda b, h: (b, 0, 0))
    cparams = pltpu.CompilerParams(
        dimension_semantics=("parallel", "parallel"),
        vmem_limit_bytes=_VMEM_LIMIT)
    grid = (batch, num_heads // hb)
    ctx_sd = jax.ShapeDtypeStruct((batch * seq, H), out_dtype)

    if output_attentions:
        probs_spec = pl.BlockSpec((None, hb, seq, seq),
                                  lambda b, h: (b, h, 0, 0))
        ctx2d, probs = pl.pallas_call(
            kernel,
            out_shape=(ctx_sd,
                       jax.ShapeDtypeStruct((batch, num_heads, seq, seq),
                                            jnp.float32)),
            grid=grid,
            in_specs=[qkv_spec, qkv_spec, qkv_spec, mask_spec],
            out_specs=(ctx_spec, probs_spec),
            compiler_params=cparams,
        )(q2d, k2d, v2d, mask3)
        return ctx2d, probs

    ctx2d = pl.pallas_call(
        kernel,
        out_shape=ctx_sd,
        grid=grid,
        in_specs=[qkv_spec, qkv_spec, qkv_spec, mask_spec],
        out_specs=ctx_spec,
        compiler_params=cparams,
    )(q2d, k2d, v2d, mask3)
    return ctx2d, None


# -----------------------------------------------------------------------------
# Module wrapper (plain-JAX glue: packing params, reshapes; no HBM transposes)
# -----------------------------------------------------------------------------
def bert_self_attention(hidden_states, attention_mask, params,
                        num_attention_heads, output_attentions=True,
                        compute_dtype=None, force_unfused=False):
    """Forward pass of BertSelfAttention (eval mode).

    hidden_states: [B, S, H]; attention_mask: additive, [B, 1, 1, S] or None.
    compute_dtype: MXU operand dtype (e.g. jnp.bfloat16); accumulation is f32.
    """
    B, S, H = hidden_states.shape
    D = H // num_attention_heads
    cdt = (jnp.dtype(compute_dtype) if compute_dtype is not None
           else jnp.dtype(hidden_states.dtype))

    x2d = hidden_states.reshape(B * S, H)
    # nn.Linear: y = x @ W.T + b.  Pre-pack the three projections into one
    # [H, 3H] weight (cast to the MXU operand dtype) and one [1, 3H] bias.
    wqkv = jnp.concatenate(
        [params["wq"].T, params["wk"].T, params["wv"].T], axis=1).astype(cdt)
    bqkv = jnp.concatenate(
        [params["bq"], params["bk"], params["bv"]]).reshape(1, 3 * H).astype(jnp.float32)

    if attention_mask is None:
        mask3 = jnp.zeros((B, 1, S), jnp.float32)
    else:
        mask3 = attention_mask.reshape(B, 1, S).astype(jnp.float32)

    est = _fused_vmem_bytes(S, H, num_attention_heads,
                            jnp.dtype(hidden_states.dtype).itemsize,
                            cdt.itemsize, output_attentions)
    if (not force_unfused) and est <= _FUSED_VMEM_BUDGET:
        ctx2d, probs = fused_self_attention(
            x2d, wqkv, bqkv, mask3, B, S, num_attention_heads, D,
            out_dtype=hidden_states.dtype,
            output_attentions=output_attentions, compute_dtype=cdt)
    else:
        q2d, k2d, v2d = qkv_projection(x2d, wqkv, bqkv, cdt)
        ctx2d, probs = multihead_attention(
            q2d, k2d, v2d, mask3, B, S, num_attention_heads, D,
            out_dtype=hidden_states.dtype,
            output_attentions=output_attentions)

    # Heads are already stored interleaved as [.., h*D + d]; this reshape is
    # exactly permute(0,2,1,3).contiguous().view(B, S, H) of the torch module.
    context_layer = ctx2d.reshape(B, S, H)
    if output_attentions:
        return context_layer, probs
    return (context_layer,)


# -----------------------------------------------------------------------------
# Pure-JAX reference for correctness checks
# -----------------------------------------------------------------------------
def reference(hidden_states, attention_mask, params, num_heads):
    B, S, H = hidden_states.shape
    D = H // num_heads
    q = hidden_states @ params["wq"].T + params["bq"]
    k = hidden_states @ params["wk"].T + params["bk"]
    v = hidden_states @ params["wv"].T + params["bv"]
    sh = lambda t: t.reshape(B, S, num_heads, D).transpose(0, 2, 1, 3)
    q, k, v = sh(q), sh(k), sh(v)
    scores = jnp.einsum("bhqd,bhkd->bhqk", q, k) / math.sqrt(D)
    if attention_mask is not None:
        scores = scores + attention_mask
    probs = jax.nn.softmax(scores, axis=-1)
    ctx = jnp.einsum("bhqk,bhkd->bhqd", probs, v)
    return ctx.transpose(0, 2, 1, 3).reshape(B, S, H), probs


def _make_inputs(key, B, S, H):
    k_x, k_m, kwq, kwk, kwv, kbq, kbk, kbv = jax.random.split(key, 8)
    hidden_states = jax.random.normal(k_x, (B, S, H), jnp.float32)
    # Standard BERT additive mask: 0 for attended positions, -10000 for masked.
    keep = (jax.random.uniform(k_m, (B, S)) > 0.1).astype(jnp.float32)
    attention_mask = ((1.0 - keep) * -10000.0).reshape(B, 1, 1, S)
    w_scale = 1.0 / math.sqrt(H)
    params = {
        "wq": jax.random.normal(kwq, (H, H), jnp.float32) * w_scale,
        "wk": jax.random.normal(kwk, (H, H), jnp.float32) * w_scale,
        "wv": jax.random.normal(kwv, (H, H), jnp.float32) * w_scale,
        "bq": jax.random.normal(kbq, (H,), jnp.float32) * 0.01,
        "bk": jax.random.normal(kbk, (H,), jnp.float32) * 0.01,
        "bv": jax.random.normal(kbv, (H,), jnp.float32) * 0.01,
    }
    return hidden_states, attention_mask, params


if __name__ == "__main__":
    key = jax.random.PRNGKey(0)
    k1, k2 = jax.random.split(key)

    # --- small config consistent with the module: hidden=32, heads=4 (D=8) ---
    B, S, H, NH = 2, 8, 32, 4
    hs, mask, params = _make_inputs(k1, B, S, H)

    ctx, probs = bert_self_attention(hs, mask, params, num_attention_heads=NH,
                                     output_attentions=True)
    jax.block_until_ready((ctx, probs))
    ref_ctx, ref_probs = reference(hs, mask, params, NH)
    # Tolerances account for the TPU's default matmul operand precision and for
    # folding the 1/sqrt(D) scale into Q inside the kernel.
    assert jnp.allclose(ctx, ref_ctx, atol=2e-2, rtol=2e-2), "f32 context mismatch"
    assert jnp.allclose(probs, ref_probs, atol=2e-2, rtol=2e-2), "f32 probs mismatch"

    # probs-free variant (skips the [B, nH, S, S] HBM writeback entirely)
    (ctx_np,) = bert_self_attention(hs, mask, params, num_attention_heads=NH,
                                    output_attentions=False)
    jax.block_until_ready(ctx_np)
    assert jnp.allclose(ctx_np, ref_ctx, atol=2e-2, rtol=2e-2), \
        "no-probs context mismatch"

    # --- lane-dense config (D=64) exercising the bf16 MXU path (fused) ---
    B2, S2, H2, NH2 = 2, 128, 256, 4
    hs2, mask2, params2 = _make_inputs(k2, B2, S2, H2)
    ctx2, probs2 = bert_self_attention(hs2, mask2, params2,
                                       num_attention_heads=NH2,
                                       output_attentions=True,
                                       compute_dtype=jnp.bfloat16)
    jax.block_until_ready((ctx2, probs2))
    ref_ctx2, ref_probs2 = reference(hs2, mask2, params2, NH2)
    assert jnp.allclose(ctx2, ref_ctx2, atol=6e-2, rtol=6e-2), "bf16 context mismatch"
    assert jnp.allclose(probs2, ref_probs2, atol=6e-2, rtol=6e-2), "bf16 probs mismatch"

    # --- fallback (two-kernel, head-block-tiled) path on the same config ---
    ctx3, probs3 = bert_self_attention(hs2, mask2, params2,
                                       num_attention_heads=NH2,
                                       output_attentions=True,
                                       compute_dtype=jnp.bfloat16,
                                       force_unfused=True)
    jax.block_until_ready((ctx3, probs3))
    assert jnp.allclose(ctx3, ref_ctx2, atol=6e-2, rtol=6e-2), \
        "fallback context mismatch"
    assert jnp.allclose(probs3, ref_probs2, atol=6e-2, rtol=6e-2), \
        "fallback probs mismatch"

    print("KERNEL_OK")
</pallas_src>

<mosaic_0001>
module attributes {stable_mosaic.version = 11 : i64} {
  func.func @fused_attn_kernel(%arg0: i32, %arg1: memref<8x32xf32, #tpu.memory_space<vmem>>, %arg2: memref<32x96xf32, #tpu.memory_space<vmem>>, %arg3: memref<1x96xf32, #tpu.memory_space<vmem>>, %arg4: memref<1x1x8xf32, #tpu.memory_space<vmem>>, %arg5: memref<8x32xf32, #tpu.memory_space<vmem>>, %arg6: memref<1x4x8x8xf32, #tpu.memory_space<vmem>>) attributes {dimension_semantics = [#tpu.dimension_semantics<parallel>], iteration_bounds = array<i64: 2>, scalar_prefetch = 0 : i64, scratch_operands = 0 : i64, tpu.core_type = #tpu.core_type<tc>, window_params = [{transform_indices = @transform_0, window_bounds = array<i64: 8, 32>}, {pipeline_mode = #tpu.pipeline_mode<synchronous>, transform_indices = @transform_1, window_bounds = array<i64: 32, 96>}, {pipeline_mode = #tpu.pipeline_mode<synchronous>, transform_indices = @transform_2, window_bounds = array<i64: 1, 96>}, {transform_indices = @transform_3, window_bounds = array<i64: 1, 1, 8>}, {transform_indices = @transform_4, window_bounds = array<i64: 8, 32>}, {transform_indices = @transform_5, window_bounds = array<i64: 1, 4, 8, 8>}]} {
    %c0 = arith.constant 0 : index
    %c0_0 = arith.constant 0 : index
    %0 = vector.load %arg1[%c0, %c0_0] : memref<8x32xf32, #tpu.memory_space<vmem>>, vector<8x32xf32>
    %c0_1 = arith.constant 0 : index
    %c0_2 = arith.constant 0 : index
    %1 = vector.load %arg2[%c0_1, %c0_2] : memref<32x96xf32, #tpu.memory_space<vmem>>, vector<32x96xf32>
    %cst = arith.constant dense<0.000000e+00> : vector<8x96xf32>
    %2 = tpu.matmul %0, %1, %cst {dimension_numbers = #tpu.dot_dimension_numbers<[1], [0], [0], [1], [0, 0, 1, 1], [], []>} : vector<8x32xf32>, vector<32x96xf32>, vector<8x96xf32> -> vector<8x96xf32>
    %c0_3 = arith.constant 0 : index
    %c0_4 = arith.constant 0 : index
    %3 = vector.load %arg3[%c0_3, %c0_4] : memref<1x96xf32, #tpu.memory_space<vmem>>, vector<1x96xf32>
    %4 = vector.broadcast %3 : vector<1x96xf32> to vector<8x96xf32>
    %5 = arith.addf %2, %4 : vector<8x96xf32>
    %c0_5 = arith.constant 0 : index
    %c0_6 = arith.constant 0 : index
    %c0_7 = arith.constant 0 : index
    %6 = vector.load %arg4[%c0_5, %c0_6, %c0_7] : memref<1x1x8xf32, #tpu.memory_space<vmem>>, vector<1x1x8xf32>
    %7 = vector.shape_cast %6 : vector<1x1x8xf32> to vector<1x8xf32>
    %8 = vector.extract_strided_slice %5 {offsets = [0, 0], sizes = [8, 32], strides = [1, 1]} : vector<8x96xf32> to vector<8x32xf32>
    %9 = vector.extract_strided_slice %5 {offsets = [0, 32], sizes = [8, 32], strides = [1, 1]} : vector<8x96xf32> to vector<8x32xf32>
    %10 = vector.extract_strided_slice %5 {offsets = [0, 64], sizes = [8, 32], strides = [1, 1]} : vector<8x96xf32> to vector<8x32xf32>
    %11 = vector.extract_strided_slice %8 {offsets = [0, 0], sizes = [8, 8], strides = [1, 1]} : vector<8x32xf32> to vector<8x8xf32>
    %cst_8 = arith.constant 0.353553385 : f32
    %12 = vector.broadcast %cst_8 : f32 to vector<8x8xf32>
    %13 = arith.mulf %11, %12 : vector<8x8xf32>
    %14 = vector.extract_strided_slice %9 {offsets = [0, 0], sizes = [8, 8], strides = [1, 1]} : vector<8x32xf32> to vector<8x8xf32>
    %15 = vector.extract_strided_slice %10 {offsets = [0, 0], sizes = [8, 8], strides = [1, 1]} : vector<8x32xf32> to vector<8x8xf32>
    %cst_9 = arith.constant dense<0.000000e+00> : vector<8x8xf32>
    %16 = tpu.matmul %13, %14, %cst_9 {dimension_numbers = #tpu.dot_dimension_numbers<[1], [1], [0], [0], [0, 0, 1, 0], [], []>} : vector<8x8xf32>, vector<8x8xf32>, vector<8x8xf32> -> vector<8x8xf32>
    %17 = vector.broadcast %7 : vector<1x8xf32> to vector<8x8xf32>
    %18 = arith.addf %16, %17 : vector<8x8xf32>
    %cst_10 = arith.constant dense<0xFF800000> : vector<8xf32>
    %19 = vector.multi_reduction <maximumf>, %18, %cst_10 [1] : vector<8x8xf32> to vector<8xf32>
    %20 = vector.shape_cast %19 : vector<8xf32> to vector<8x1xf32>
    %21 = vector.broadcast %20 : vector<8x1xf32> to vector<8x8xf32>
    %22 = arith.subf %18, %21 : vector<8x8xf32>
    %23 = math.exp %22 : vector<8x8xf32>
    %cst_11 = arith.constant dense<0.000000e+00> : vector<8xf32>
    %24 = vector.multi_reduction <add>, %23, %cst_11 [1] : vector<8x8xf32> to vector<8xf32>
    %25 = vector.shape_cast %24 : vector<8xf32> to vector<8x1xf32>
    %26 = tpu.reciprocal %25 : vector<8x1xf32> -> vector<8x1xf32>
    %27 = vector.broadcast %26 : vector<8x1xf32> to vector<8x8xf32>
    %28 = arith.mulf %23, %27 : vector<8x8xf32>
    %c0_12 = arith.constant 0 : index
    %c0_13 = arith.constant 0 : index
    %c0_14 = arith.constant 0 : index
    %c0_15 = arith.constant 0 : index
    %29 = vector.load %arg6[%c0_12, %c0_13, %c0_14, %c0_15] : memref<1x4x8x8xf32, #tpu.memory_space<vmem>>, vector<1x1x8x8xf32>
    %30 = vector.shape_cast %29 : vector<1x1x8x8xf32> to vector<8x8xf32>
    %31 = vector.shape_cast %28 : vector<8x8xf32> to vector<1x1x8x8xf32>
    tpu.vector_store %arg6[%c0_12, %c0_13, %c0_14, %c0_15], %31 {strides = array<i32>} : memref<1x4x8x8xf32, #tpu.memory_space<vmem>>, vector<1x1x8x8xf32>,
    %cst_16 = arith.constant dense<0.000000e+00> : vector<8x8xf32>
    %32 = tpu.matmul %28, %15, %cst_16 {dimension_numbers = #tpu.dot_dimension_numbers<[1], [0], [0], [1], [0, 0, 1, 1], [], []>} : vector<8x8xf32>, vector<8x8xf32>, vector<8x8xf32> -> vector<8x8xf32>
    %33 = vector.extract_strided_slice %8 {offsets = [0, 8], sizes = [8, 8], strides = [1, 1]} : vector<8x32xf32> to vector<8x8xf32>
    %cst_17 = arith.constant 0.353553385 : f32
    %34 = vector.broadcast %cst_17 : f32 to vector<8x8xf32>
    %35 = arith.mulf %33, %34 : vector<8x8xf32>
    %36 = vector.extract_strided_slice %9 {offsets = [0, 8], sizes = [8, 8], strides = [1, 1]} : vector<8x32xf32> to vector<8x8xf32>
    %37 = vector.extract_strided_slice %10 {offsets = [0, 8], sizes = [8, 8], strides = [1, 1]} : vector<8x32xf32> to vector<8x8xf32>
    %cst_18 = arith.constant dense<0.000000e+00> : vector<8x8xf32>
    %38 = tpu.matmul %35, %36, %cst_18 {dimension_numbers = #tpu.dot_dimension_numbers<[1], [1], [0], [0], [0, 0, 1, 0], [], []>} : vector<8x8xf32>, vector<8x8xf32>, vector<8x8xf32> -> vector<8x8xf32>
    %39 = vector.broadcast %7 : vector<1x8xf32> to vector<8x8xf32>
    %40 = arith.addf %38, %39 : vector<8x8xf32>
    %cst_19 = arith.constant dense<0xFF800000> : vector<8xf32>
    %41 = vector.multi_reduction <maximumf>, %40, %cst_19 [1] : vector<8x8xf32> to vector<8xf32>
    %42 = vector.shape_cast %41 : vector<8xf32> to vector<8x1xf32>
    %43 = vector.broadcast %42 : vector<8x1xf32> to vector<8x8xf32>
    %44 = arith.subf %40, %43 : vector<8x8xf32>
    %45 = math.exp %44 : vector<8x8xf32>
    %cst_20 = arith.constant dense<0.000000e+00> : vector<8xf32>
    %46 = vector.multi_reduction <add>, %45, %cst_20 [1] : vector<8x8xf32> to vector<8xf32>
    %47 = vector.shape_cast %46 : vector<8xf32> to vector<8x1xf32>
    %48 = tpu.reciprocal %47 : vector<8x1xf32> -> vector<8x1xf32>
    %49 = vector.broadcast %48 : vector<8x1xf32> to vector<8x8xf32>
    %50 = arith.mulf %45, %49 : vector<8x8xf32>
    %c0_21 = arith.constant 0 : index
    %c1 = arith.constant 1 : index
    %c0_22 = arith.constant 0 : index
    %c0_23 = arith.constant 0 : index
    %51 = vector.load %arg6[%c0_21, %c1, %c0_22, %c0_23] : memref<1x4x8x8xf32, #tpu.memory_space<vmem>>, vector<1x1x8x8xf32>
    %52 = vector.shape_cast %51 : vector<1x1x8x8xf32> to vector<8x8xf32>
    %53 = vector.shape_cast %50 : vector<8x8xf32> to vector<1x1x8x8xf32>
    tpu.vector_store %arg6[%c0_21, %c1, %c0_22, %c0_23], %53 {strides = array<i32>} : memref<1x4x8x8xf32, #tpu.memory_space<vmem>>, vector<1x1x8x8xf32>,
    %cst_24 = arith.constant dense<0.000000e+00> : vector<8x8xf32>
    %54 = tpu.matmul %50, %37, %cst_24 {dimension_numbers = #tpu.dot_dimension_numbers<[1], [0], [0], [1], [0, 0, 1, 1], [], []>} : vector<8x8xf32>, vector<8x8xf32>, vector<8x8xf32> -> vector<8x8xf32>
    %55 = vector.extract_strided_slice %8 {offsets = [0, 16], sizes = [8, 8], strides = [1, 1]} : vector<8x32xf32> to vector<8x8xf32>
    %cst_25 = arith.constant 0.353553385 : f32
    %56 = vector.broadcast %cst_25 : f32 to vector<8x8xf32>
    %57 = arith.mulf %55, %56 : vector<8x8xf32>
    %58 = vector.extract_strided_slice %9 {offsets = [0, 16], sizes = [8, 8], strides = [1, 1]} : vector<8x32xf32> to vector<8x8xf32>
    %59 = vector.extract_strided_slice %10 {offsets = [0, 16], sizes = [8, 8], strides = [1, 1]} : vector<8x32xf32> to vector<8x8xf32>
    %cst_26 = arith.constant dense<0.000000e+00> : vector<8x8xf32>
    %60 = tpu.matmul %57, %58, %cst_26 {dimension_numbers = #tpu.dot_dimension_numbers<[1], [1], [0], [0], [0, 0, 1, 0], [], []>} : vector<8x8xf32>, vector<8x8xf32>, vector<8x8xf32> -> vector<8x8xf32>
    %61 = vector.broadcast %7 : vector<1x8xf32> to vector<8x8xf32>
    %62 = arith.addf %60, %61 : vector<8x8xf32>
    %cst_27 = arith.constant dense<0xFF800000> : vector<8xf32>
    %63 = vector.multi_reduction <maximumf>, %62, %cst_27 [1] : vector<8x8xf32> to vector<8xf32>
    %64 = vector.shape_cast %63 : vector<8xf32> to vector<8x1xf32>
    %65 = vector.broadcast %64 : vector<8x1xf32> to vector<8x8xf32>
    %66 = arith.subf %62, %65 : vector<8x8xf32>
    %67 = math.exp %66 : vector<8x8xf32>
    %cst_28 = arith.constant dense<0.000000e+00> : vector<8xf32>
    %68 = vector.multi_reduction <add>, %67, %cst_28 [1] : vector<8x8xf32> to vector<8xf32>
    %69 = vector.shape_cast %68 : vector<8xf32> to vector<8x1xf32>
    %70 = tpu.reciprocal %69 : vector<8x1xf32> -> vector<8x1xf32>
    %71 = vector.broadcast %70 : vector<8x1xf32> to vector<8x8xf32>
    %72 = arith.mulf %67, %71 : vector<8x8xf32>
    %c0_29 = arith.constant 0 : index
    %c2 = arith.constant 2 : index
    %c0_30 = arith.constant 0 : index
    %c0_31 = arith.constant 0 : index
    %73 = vector.load %arg6[%c0_29, %c2, %c0_30, %c0_31] : memref<1x4x8x8xf32, #tpu.memory_space<vmem>>, vector<1x1x8x8xf32>
    %74 = vector.shape_cast %73 : vector<1x1x8x8xf32> to vector<8x8xf32>
    %75 = vector.shape_cast %72 : vector<8x8xf32> to vector<1x1x8x8xf32>
    tpu.vector_store %arg6[%c0_29, %c2, %c0_30, %c0_31], %75 {strides = array<i32>} : memref<1x4x8x8xf32, #tpu.memory_space<vmem>>, vector<1x1x8x8xf32>,
    %cst_32 = arith.constant dense<0.000000e+00> : vector<8x8xf32>
    %76 = tpu.matmul %72, %59, %cst_32 {dimension_numbers = #tpu.dot_dimension_numbers<[1], [0], [0], [1], [0, 0, 1, 1], [], []>} : vector<8x8xf32>, vector<8x8xf32>, vector<8x8xf32> -> vector<8x8xf32>
    %77 = vector.extract_strided_slice %8 {offsets = [0, 24], sizes = [8, 8], strides = [1, 1]} : vector<8x32xf32> to vector<8x8xf32>
    %cst_33 = arith.constant 0.353553385 : f32
    %78 = vector.broadcast %cst_33 : f32 to vector<8x8xf32>
    %79 = arith.mulf %77, %78 : vector<8x8xf32>
    %80 = vector.extract_strided_slice %9 {offsets = [0, 24], sizes = [8, 8], strides = [1, 1]} : vector<8x32xf32> to vector<8x8xf32>
    %81 = vector.extract_strided_slice %10 {offsets = [0, 24], sizes = [8, 8], strides = [1, 1]} : vector<8x32xf32> to vector<8x8xf32>
    %cst_34 = arith.constant dense<0.000000e+00> : vector<8x8xf32>
    %82 = tpu.matmul %79, %80, %cst_34 {dimension_numbers = #tpu.dot_dimension_numbers<[1], [1], [0], [0], [0, 0, 1, 0], [], []>} : vector<8x8xf32>, vector<8x8xf32>, vector<8x8xf32> -> vector<8x8xf32>
    %83 = vector.broadcast %7 : vector<1x8xf32> to vector<8x8xf32>
    %84 = arith.addf %82, %83 : vector<8x8xf32>
    %cst_35 = arith.constant dense<0xFF800000> : vector<8xf32>
    %85 = vector.multi_reduction <maximumf>, %84, %cst_35 [1] : vector<8x8xf32> to vector<8xf32>
    %86 = vector.shape_cast %85 : vector<8xf32> to vector<8x1xf32>
    %87 = vector.broadcast %86 : vector<8x1xf32> to vector<8x8xf32>
    %88 = arith.subf %84, %87 : vector<8x8xf32>
    %89 = math.exp %88 : vector<8x8xf32>
    %cst_36 = arith.constant dense<0.000000e+00> : vector<8xf32>
    %90 = vector.multi_reduction <add>, %89, %cst_36 [1] : vector<8x8xf32> to vector<8xf32>
    %91 = vector.shape_cast %90 : vector<8xf32> to vector<8x1xf32>
    %92 = tpu.reciprocal %91 : vector<8x1xf32> -> vector<8x1xf32>
    %93 = vector.broadcast %92 : vector<8x1xf32> to vector<8x8xf32>
    %94 = arith.mulf %89, %93 : vector<8x8xf32>
    %c0_37 = arith.constant 0 : index
    %c3 = arith.constant 3 : index
    %c0_38 = arith.constant 0 : index
    %c0_39 = arith.constant 0 : index
    %95 = vector.load %arg6[%c0_37, %c3, %c0_38, %c0_39] : memref<1x4x8x8xf32, #tpu.memory_space<vmem>>, vector<1x1x8x8xf32>
    %96 = vector.shape_cast %95 : vector<1x1x8x8xf32> to vector<8x8xf32>
    %97 = vector.shape_cast %94 : vector<8x8xf32> to vector<1x1x8x8xf32>
    tpu.vector_store %arg6[%c0_37, %c3, %c0_38, %c0_39], %97 {strides = array<i32>} : memref<1x4x8x8xf32, #tpu.memory_space<vmem>>, vector<1x1x8x8xf32>,
    %cst_40 = arith.constant dense<0.000000e+00> : vector<8x8xf32>
    %98 = tpu.matmul %94, %81, %cst_40 {dimension_numbers = #tpu.dot_dimension_numbers<[1], [0], [0], [1], [0, 0, 1, 1], [], []>} : vector<8x8xf32>, vector<8x8xf32>, vector<8x8xf32> -> vector<8x8xf32>
    %99 = tpu.concatenate %32, %54, %76, %98 in 1 : vector<8x8xf32>, vector<8x8xf32>, vector<8x8xf32>, vector<8x8xf32> -> vector<8x32xf32>
    %c0_41 = arith.constant 0 : index
    %c0_42 = arith.constant 0 : index
    %100 = vector.load %arg5[%c0_41, %c0_42] : memref<8x32xf32, #tpu.memory_space<vmem>>, vector<8x32xf32>
    tpu.vector_store %arg5[%c0_41, %c0_42], %99 {strides = array<i32>} : memref<8x32xf32, #tpu.memory_space<vmem>>, vector<8x32xf32>,
    return
  }
  func.func @transform_0(%arg0: i32) -> (i32, i32) {
    %c0_i32 = arith.constant 0 : i32
    %c0_i32_0 = arith.constant 0 : i32
    return %arg0, %c0_i32 : i32, i32
  }
  func.func @transform_1(%arg0: i32) -> (i32, i32) {
    %c0_i32 = arith.constant 0 : i32
    %c0_i32_0 = arith.constant 0 : i32
    %c0_i32_1 = arith.constant 0 : i32
    return %c0_i32, %c0_i32_0 : i32, i32
  }
  func.func @transform_2(%arg0: i32) -> (i32, i32) {
    %c0_i32 = arith.constant 0 : i32
    %c0_i32_0 = arith.constant 0 : i32
    %c0_i32_1 = arith.constant 0 : i32
    return %c0_i32, %c0_i32_0 : i32, i32
  }
  func.func @transform_3(%arg0: i32) -> (i32, i32, i32) {
    %c0_i32 = arith.constant 0 : i32
    %c0_i32_0 = arith.constant 0 : i32
    %c0_i32_1 = arith.constant 0 : i32
    return %arg0, %c0_i32, %c0_i32_0 : i32, i32, i32
  }
  func.func @transform_4(%arg0: i32) -> (i32, i32) {
    %c0_i32 = arith.constant 0 : i32
    %c0_i32_0 = arith.constant 0 : i32
    return %arg0, %c0_i32 : i32, i32
  }
  func.func @transform_5(%arg0: i32) -> (i32, i32, i32, i32) {
    %c0_i32 = arith.constant 0 : i32
    %c0_i32_0 = arith.constant 0 : i32
    %c0_i32_1 = arith.constant 0 : i32
    %c0_i32_2 = arith.constant 0 : i32
    return %arg0, %c0_i32, %c0_i32_0, %c0_i32_1 : i32, i32, i32, i32
  }
}

</mosaic_0001>

<bundles_post_ra>
// kernel: tpu_custom_call.1
= control target key start
LH: loop header
LB: loop body
LE: loop exit
PB: predicated region body
PF: predicated region fallthrough
CT: control target
= control target key end

     0   :  { %11 = vsyncpa [#allocation3], 0  ;;  %s2160_s0 = inlined_call_operand.hbm [shape: f32[16,32], index: 0, kind: input, shape index: {}]   ;;  %s2161_s1 = inlined_call_operand.hbm [shape: f32[32,96], index: 1, kind: input, shape index: {}]   ;;  %s2162_s2 = inlined_call_operand.hbm [shape: f32[1,96], index: 2, kind: input, shape index: {}]   ;;  %s2163_s3 = inlined_call_operand.hbm [shape: f32[2,1,8], index: 3, kind: input, shape index: {}]   ;;  %s2164_s4 = inlined_call_operand.hbm [shape: f32[16,32], index: 4, kind: output, shape index: {0}]   ;;  %s2165_s5 = inlined_call_operand.hbm [shape: f32[2,4,8,8], index: 5, kind: output, shape index: {1}]  }
   0x1   :  { %13 = vsyncpa [#allocation3 + $0x1], 0 }
   0x2   :  { %14 = vsyncpa [#allocation6], 0 }
   0x3   :  { %15 = vsyncpa [#allocation9], 0 }
   0x4   :  { %17 = vsyncpa [#allocation9 + $0x1], 0 }
   0x5   :  { %18 = vsyncpa [#allocation4], 0 }
   0x6   :  { %20 = vsyncpa [#allocation4 + $0x1], 0 }
   0x7   :  { %21 = vsyncpa [#allocation12], 0 }
   0x8   :  { %23 = vsyncpa [#allocation12 + $0x1], 0  ;;  %s1779_s18 = smov 0   ;;  %s1781_s19 = smov 0  }
   0x9   :  { %s1783_s20 = smov 0   ;;  %s1785_s21 = smov 0  }
   0xa LB: > { %s1800_s22 = sadd.s32 4294967295, %s1721_s21   ;;  %s1268_s23 = sadd.s32 4294967294, %s1721_s21   ;;  %s1721_s21 = sphi %s1785_s21, %s2187_s21   ;;  %s1717_s20 = sphi %s1783_s20, %s2186_s20   ;;  %s1713_s19 = sphi %s1781_s19, %s2185_s19   ;;  %s1709_s18 = sphi %s1779_s18, %s2184_s18  }
   0xb   : > { %p49_p0 = scmp.ne.s32.totalorder %s1713_s19, %s1709_s18  ;;  %p2166_p1 = scmp.eq.s32.totalorder %s1800_s22, 0 }
   0xc   : > { %p147_p3 = scmp.eq.s32.totalorder %s1268_s23, 1  ;;  %p1269_p5 = scmp.ge.s32.totalorder %s1721_s21, 1 }
   0xd   : > { %p1809_p4 = por %p2166_p1, %p49_p0  ;;  %p180_p7 = scmp.lt.s32.totalorder %s1721_s21, 3 }
   0xe   : > { %p1814_p6 = por %p147_p3, %p49_p0  ;;  %s1723_s27 = smov [#allocation5]  }
   0xf   : > { %s2170_s24 = scalar_select %p1809_p4, 1, 0 }
  0x10   : > { %s2171_s25 = scalar_select %p1814_p6, 1, 0 }
  0x11   : > { %p1819_p8 = pnand %p1269_p5, %p180_p7  ;;  %s192_s28 = sshll.u32 %s1723_s27, 4  ;;  %s1823_s28 = int_to_ptr.vmem [resolvable:$true] %s192_s28 }
  0x12   : > { %s1724_s30 = smov [#allocation7]   ;;  %s1499_s9 = scalar_lea.hbm %s2161_s1, 512 }
  0x13   : > { %s2172_s26 = scalar_select %p1819_p8, 1, 0 }
  0x14   : > { %p1402_p9 = pneg %p1819_p8  ;;  %s206_s6 = sshll.u32 %s1724_s30, 4  ;;  %s1834_s6 = int_to_ptr.vmem [resolvable:$true] %s206_s6 }
  0x15   : > { %p1500_p12 = scmp.ne.s32.totalorder %s2161_s1, %s1499_s9  ;;  %p1506_p5 = scmp.lt.u32.totalorder %s1499_s9, %s2161_s1 }
  0x16   : > { %p1830_p11 = pnand %p1402_p9, %p2166_p1 }
  0x18   : > { %p1501_p13 = pneg %p1830_p11 }
  0x1a   : > { %p1502_p0 = pnand %p1501_p13, %p1500_p12 }
  0x1c   : > { %p1503_p3 = pneg %p1502_p0 }
  0x1e   : > { %p1508_p7 = pnand %p1506_p5, %p1503_p3 }
  0x20   : > { %1511 = shalt.err (!%p1508_p7)
}
  0x21   : > { %s1512_s14 = scalar_lea.vmem %s1823_s28, 512  ;;  %p1520_p2 = scmp.lt.s32.totalorder %s1823_s28, %s1823_s28 }
  0x22   : > { %p1513_p9 = scmp.ne.s32.totalorder %s1823_s28, %s1512_s14  ;;  %p1521_p12 = scmp.lt.s32.totalorder %s1512_s14, %s1512_s14 }
  0x24   : > { %p1515_p10 = pnand %p1513_p9, %p1501_p13  ;;  %p1522_p0 = por %p1521_p12, %p1520_p2 }
  0x26   : > { %p1516_p1 = pneg %p1515_p10 }
  0x28   : > { %p1523_p6 = pnand %p1522_p0, %p1516_p1 }
  0x2a   : > { %1526 = shalt.err (!%p1523_p6)
}
  0x2b   : > { %s1725_s15 = smov 128   ;;  %s1726_s16 = smov 8  }
  0x2c   : > { %1405 = dma.hbm_to_vmem [thread:$0]  (!%p1830_p11), %s2161_s1, 512, %s1823_s28, [#allocation6], %s1725_s15, %s1725_s15, %s1726_s16  }
  0x2d   : > { %s1527_s7 = scalar_lea.hbm %s2162_s2, 16 }
  0x2e   : > { %p1528_p2 = scmp.ne.s32.totalorder %s2162_s2, %s1527_s7  ;;  %p1534_p10 = scmp.lt.u32.totalorder %s1527_s7, %s2162_s2 }
  0x30   : > { %p1530_p1 = pnand %p1528_p2, %p1501_p13 }
  0x32   : > { %p1531_p6 = pneg %p1530_p1 }
  0x34   : > { %p1536_p3 = pnand %p1534_p10, %p1531_p6 }
  0x36   : > { %1539 = shalt.err (!%p1536_p3)
}
  0x37   : > { %s1540_s28 = scalar_lea.vmem %s1834_s6, 16  ;;  %s1547_s12 = scalar_lea.vmem %s1834_s6, 32 }
  0x38   : > { %p1541_p5 = scmp.ne.s32.totalorder %s1834_s6, %s1540_s28  ;;  %p1548_p12 = scmp.lt.s32.totalorder %s1834_s6, %s1834_s6 }
  0x39   : > { %p1549_p0 = scmp.lt.s32.totalorder %s1547_s12, %s1540_s28 }
  0x3a   : > { %p1543_p7 = pnand %p1541_p5, %p1501_p13 }
  0x3b   : > { %p1550_p2 = por %p1549_p0, %p1548_p12 }
  0x3c   : > { %p1544_p9 = pneg %p1543_p7 }
  0x3e   : > { %p1551_p1 = pnand %p1550_p2, %p1544_p9 }
  0x40   : > { %1554 = shalt.err (!%p1551_p1)
}
  0x41   : > { %1408 = dma.hbm_to_vmem [thread:$0]  (!%p1830_p11), %s2162_s2, 16, %s1834_s6, [#allocation6]  }
  0x42   : > { %s1890_s15 = sadd.s32 1, %s1721_s21   ;;  %s36_s29 = sadd.s32 1, %s1717_s20 }
  0x43   : > { %s33_s16 = ssub.s32 %s1721_s21, %s1890_s15  ;;  %p43_p13 = scmp.ne.s32.totalorder %s1717_s20, %s1713_s19 }
  0x44   : > { %p34_p6 = scmp.eq.s32.totalorder %s33_s16, 0  ;;  %p44_p10 = scmp.eq.s32.totalorder %s1721_s21, 0 }
  0x45   : > { %p2174_p3 = scmp.eq.s32.totalorder %s1800_s22, 1  ;;  %p1425_p7 = scmp.lt.s32.totalorder %s1721_s21, 2 }
  0x46   : > { %s1906_s23 = scalar_select %p34_p6, %s1717_s20, %s36_s29  }
  0x47   : > { %p1900_p5 = por %p2174_p3, %p43_p13  ;;  %p45_p9 = por %p44_p10, %p43_p13 }
  0x48   : > { %s1909_s27 = sand.u32 1, %s1717_s20   ;;  %s1274_s30 = sshll.u32 %s1721_s21, 7 }
  0x49   : > { %s2175_s17 = scalar_select %p1900_p5, 1, 0 }
  0x4a   : > { %s1273_s6 = sshll.u32 %s1909_s27, 3  ;;  %s1916_s9 = scalar_lea.hbm %s2160_s0, %s1274_s30 }
  0x4b   : > { %s221_s10 = scalar_lea.vmem [#allocation2], %s1273_s6  ;;  %p1920_p11 = pnand %p1425_p7, %p45_p9 }
  0x4c   : > { %s228_s11 = sshll.u32 %s221_s10, 4  ;;  %s1275_s12 = sshll.u32 %s1721_s21, 4  ;;  %s1918_s11 = int_to_ptr.vmem [resolvable:$true] %s228_s11 }
  0x4d   : > { %s218_s13 = scalar_lea.sflag [#allocation3], %s1909_s27  ;;  %s1555_s14 = scalar_lea.hbm %s1916_s9, 128 }
  0x4e   : > { %p1556_p12 = scmp.ne.s32.totalorder %s1916_s9, %s1555_s14  ;;  %p1557_p0 = pneg %p1920_p11 }
  0x4f   : > { %s1560_s6 = scalar_lea.hbm %s2160_s0, 256  ;;  %p1561_p13 = scmp.lt.u32.totalorder %s1916_s9, %s2160_s0 }
  0x50   : > { %p1558_p2 = pnand %p1557_p0, %p1556_p12  ;;  %p1562_p6 = scmp.lt.u32.totalorder %s1560_s6, %s1555_s14 }
  0x51   : > { %p1564_p3 = scmp.lt.u32.totalorder %s1555_s14, %s1916_s9 }
  0x52   : > { %p1559_p1 = pneg %p1558_p2  ;;  %p1563_p10 = por %p1562_p6, %p1561_p13 }
  0x54   : > { %p1565_p7 = por %p1564_p3, %p1563_p10 }
  0x56   : > { %p1566_p9 = pnand %p1565_p7, %p1559_p1 }
  0x58   : > { %1569 = shalt.err (!%p1566_p9)
}
  0x59   : > { %s1570_s8 = scalar_lea.vmem %s1918_s11, 128  ;;  %s1727_s10 = smov [#allocation2]  }
  0x5a   : > { %p1571_p12 = scmp.ne.s32.totalorder %s1918_s11, %s1570_s8  ;;  %s1575_s29 = sshll.u32 %s1727_s10, 4  ;;  %s1576_s29 = int_to_ptr.vmem [resolvable:$false] %s1575_s29 }
  0x5b   : > { %s1577_s16 = scalar_lea.vmem %s1576_s29, 256  ;;  %p1578_p4 = scmp.lt.s32.totalorder %s1918_s11, %s1576_s29 }
  0x5c   : > { %p1573_p2 = pnand %p1571_p12, %p1557_p0  ;;  %p1579_p13 = scmp.lt.s32.totalorder %s1577_s16, %s1570_s8 }
  0x5e   : > { %p1574_p5 = pneg %p1573_p2  ;;  %p1580_p6 = por %p1579_p13, %p1578_p4 }
  0x60   : > { %p1581_p10 = pnand %p1580_p6, %p1574_p5 }
  0x62   : > { %1584 = shalt.err (!%p1581_p10)
}
  0x63   : > { %1412 = dma.hbm_to_vmem [thread:$0]  (!%p1920_p11), %s1916_s9, 128, %s1918_s11, %s218_s13  }
  0x64   : > { %s1956_s30 = scalar_lea.hbm %s2163_s3, %s1275_s12  ;;  %s238_s7 = scalar_lea.vmem [#allocation8], %s1909_s27 }
  0x65   : > { %s245_s8 = sshll.u32 %s238_s7, 4  ;;  %s236_s10 = scalar_lea.sflag [#allocation9], %s1909_s27  ;;  %s246_s8 = int_to_ptr.vmem [resolvable:$true] %s245_s8 }
  0x66   : > { %s1585_s29 = scalar_lea.hbm %s1956_s30, 16  ;;  %s1590_s13 = scalar_lea.hbm %s2163_s3, 32 }
  0x67   : > { %p1586_p4 = scmp.ne.s32.totalorder %s1956_s30, %s1585_s29  ;;  %p1591_p3 = scmp.lt.u32.totalorder %s1956_s30, %s2163_s3 }
  0x68   : > { %p1592_p7 = scmp.lt.u32.totalorder %s1590_s13, %s1585_s29  ;;  %p1594_p12 = scmp.lt.u32.totalorder %s1585_s29, %s1956_s30 }
  0x69   : > { %p1588_p5 = pnand %p1586_p4, %p1557_p0 }
  0x6a   : > { %p1593_p9 = por %p1592_p7, %p1591_p3 }
  0x6b   : > { %p1589_p1 = pneg %p1588_p5 }
  0x6c   : > { %p1595_p2 = por %p1594_p12, %p1593_p9 }
  0x6e   : > { %p1596_p13 = pnand %p1595_p2, %p1589_p1 }
  0x70   : > { %1599 = shalt.err (!%p1596_p13)
}
  0x71   : > { %s1600_s27 = scalar_lea.vmem %s246_s8, 16  ;;  %s1728_s14 = smov [#allocation8]  }
  0x72   : > { %p1601_p6 = scmp.ne.s32.totalorder %s246_s8, %s1600_s27  ;;  %s1605_s6 = sshll.u32 %s1728_s14, 4  ;;  %s1606_s6 = int_to_ptr.vmem [resolvable:$false] %s1605_s6 }
  0x73   : > { %s1607_s7 = scalar_lea.vmem %s1606_s6, 32  ;;  %p1608_p5 = scmp.lt.s32.totalorder %s246_s8, %s1606_s6 }
  0x74   : > { %p1603_p10 = pnand %p1601_p6, %p1557_p0  ;;  %p1609_p8 = scmp.lt.s32.totalorder %s1607_s7, %s1600_s27 }
  0x76   : > { %p1604_p4 = pneg %p1603_p10  ;;  %p1610_p3 = por %p1609_p8, %p1608_p5 }
  0x78   : > { %p1611_p7 = pnand %p1610_p3, %p1604_p4 }
  0x7a   : > { %1614 = shalt.err (!%p1611_p7)
}
  0x7b   : > { %1415 = dma.hbm_to_vmem [thread:$0]  (!%p1920_p11), %s1956_s30, 16, %s246_s8, %s236_s10  }
  0x7c   : > { %p2177_p1 = scmp.ne.s32.totalorder %s2172_s26, 0 }
  0x7d   : > { %s1982_s29 = sand.u32 (!%p2177_p1), 1, %s1713_s19   ;;  %p2178_p8 = scmp.ne.s32.totalorder (!%p2177_p1), %s2170_s24, 0 }
  0x7e   : > { %254 = sbr.rel (%p2177_p1) target bundleno = 1409 (0x581), region = 36  ;;  %s1277_s9 = sshll.u32 (!%p2177_p1), %s1982_s29, 3 }
  0x7f   : > { %s257_s11 = scalar_lea.sflag (!%p2177_p1), [#allocation3], %s1982_s29  ;;  %s260_s13 = scalar_lea.vmem (!%p2177_p1), [#allocation2], %s1277_s9 }
  0x85   : > { %1688 = dma.done.wait (%p2178_p8), %s257_s11, 128  }
  0x86   : > { %1690 = vsyncadd (%p2178_p8), %s257_s11, 4294967168  ;;  %p2179_p11 = scmp.eq.s32.totalorder %s1800_s22, 0 }
  0x88   : > { %1692 = dma.done.wait (%p2179_p11), [#allocation6], 528   ;;  %p2180_p0 = pmov %p2179_p11 }
  0x89   : > { %s274_s26 = scalar_lea.sflag [#allocation9], %s1982_s29  ;;  %s276_s28 = scalar_lea.vmem [#allocation8], %s1982_s29 }
  0x8a   : > { %1694 = vsyncadd (%p2180_p0), [#allocation6], 4294966768 }
  0x8b   : > { %1696 = dma.done.wait (%p2178_p8), %s274_s26, 16  }
  0x8c   : > { %1698 = vsyncadd (%p2178_p8), %s274_s26, 4294967280  ;;  %v1729_v0 = vmov 0.0|0.0   ;;  %vm1730_vm0 = vmmov 0   ;;  %v1731_v1 = vmov 0.0   ;;  %v313_v2 = vld [vmem:[#allocation5] sm:$0xff]  ;;  %v314_v3 = vld [vmem:[#allocation5 + $0x8] sm:$0xff] }
  0x8d   : > { %1380 = vmatprep.subr.bf16.mxu0 %v1729_v0  ;;  %1337 = vmatprep.mubr.msk.f32.mxu0 %vm1730_vm0, %v1731_v1  ;;  %v315_v4 = vld [vmem:[#allocation5 + $0x10] sm:$0xff]  ;;  %v1381_v5 = vpack.c.bf16 %v314_v3, %v313_v2  ;;  %v316_v6 = vld [vmem:[#allocation5 + $0x18] sm:$0xff]  ;;  %vm324_vm1 = vcmask 261120   ;;  %v1282_v9 = vld [vmem:[#allocation7] ss:$0 sm:$0xff]  ;;  %s1732_s24 = smov 96  }
  0x8e   : > { %1340 = vmatprep.subr.mxu1 %v1731_v1  ;;  %1342 = vmatprep.mubr.msk.f32.mxu1 %vm1730_vm0, %v1731_v1  ;;  %v1384_v7 = vpack.c.bf16 %v316_v6, %v315_v4  ;;  %v312_v8 = vld [vmem:[%s260_s13] sm:$0xff]  ;;  %s1733_s30 = smov 120   ;;  %s1734_s8 = smov 88   ;;  %vm409_vm2 = vcmask 64512  }
  0x8f   : > { %1382 = vmatpush3.bf16.msra.mxu0 %v1381_v5  ;;  %s1735_s10 = smov 80   ;;  %s1736_s12 = smov 112   ;;  %v1284_v21 = vld [vmem:[%s276_s28] ss:$0 sm:$0xff] }
  0x90   : > { %1383 = vmatprep.subr.bf16.mxu0 %v1729_v0  ;;  %s1737_s16 = smov 72   ;;  %s1738_s27 = smov 104  }
  0x91   : > { %s1739_s14 = smov 56   ;;  %s1740_s6 = smov 64  }
  0x92   : > { %s1741_s7 = smov 48   ;;  %s1742_s11 = smov 40  }
  0x93   : > { %1385 = vmatpush3.bf16.msra.mxu0 %v1384_v7  ;;  %s1281_s13 = sshll.u32 %s1982_s29, 5  ;;  %s1743_s28 = smov 8  }
  0x94   : > { %1350 = vmatprep.subr.mxu0 %v1731_v1  ;;  %s2051_s26 = scalar_lea.vmem [#allocation11], %s1281_s13  ;;  %p2181_p12 = scmp.ne.s32.totalorder %s2175_s17, 0 }
  0x96   : > { %1338 = vmatmul.mubr.msk.f32.vlgmr.msra.gmra.mrb[0].mxu0 %vm324_vm1, %v312_v8 }
  0x97   : > { %1352 = vmatprep.mubr.msk.f32.mxu0 %vm1730_vm0, %v1731_v1 }
 0x169   : > { %v394_v10 = vpop.f32.mrb[0].mxu0 }
 0x16a   : > { %v2011_v11 = vadd.f32 %v1282_v9, %v394_v10  ;;  %v1339_v12 = vpop.f32.mrb[1].mxu0 }
 0x16c   : > { %407 = vrot.lane.b32.xlu0 %v2011_v11, %s1732_s24  ;;  %v399_v13 = vmul.f32 0.35355338, %v2011_v11  ;;  %s1307_s24 = sshll.u32 %s1800_s22, 9 }
 0x16e   : > { %573 = vrot.lane.b32.xlu1 %v399_v13, %s1733_s30  ;;  %s1124_s30 = sshll.u32 %s2051_s26, 4  ;;  %s2081_s30 = int_to_ptr.vmem [resolvable:$true] %s1124_s30 }
 0x170   : > { %575 = vrot.lane.b32.xlu0 %v2011_v11, %s1734_s8 }
 0x172   : > { %742 = vrot.lane.b32.xlu1 %v2011_v11, %s1735_s10 }
 0x174   : > { %740 = vrot.lane.b32.xlu0 %v399_v13, %s1736_s12  ;;  %s2079_s12 = scalar_lea.hbm %s2165_s5, %s1307_s24 }
 0x176   : > { %909 = vrot.lane.b32.xlu1 %v2011_v11, %s1737_s16  ;;  %s1098_s16 = scalar_lea.sflag [#allocation12], %s1982_s29 }
 0x178   : > { %907 = vrot.lane.b32.xlu0 %v399_v13, %s1738_s27  ;;  %s1615_s27 = scalar_lea.vmem %s2081_s30, 512 }
 0x179   : > { %p1616_p9 = scmp.ne.s32.totalorder %s2081_s30, %s1615_s27 }
 0x17b   : > { %p1617_p2 = pnand %p1616_p9, %p2181_p12 }
 0x17d   : > { %p1618_p13 = pneg %p1617_p2 }
 0x1de   : > { %v408_v14 = vpop.permute.xlu0 %407 }
 0x1df   : > { %1341 = vmatpush3.xpose.msk.msra.mxu1 %vm409_vm2, %v408_v14 }
 0x1e0   : > { %v574_v15 = vpop.permute.xlu1 %573  ;;  %1345 = vmatprep.subr.mxu1 %v1731_v1 }
 0x1e2   : > { %v576_v16 = vpop.permute.xlu0 %575  ;;  %1343 = vmatmul.mubr.msk.f32.vlgmr.msra.gmra.mrb[0].mxu1 %vm409_vm2, %v399_v13 }
 0x1e3   : > { %1351 = vmatpush3.xpose.msk.msra.mxu0 %vm409_vm2, %v576_v16  ;;  %1347 = vmatprep.mubr.msk.f32.mxu1 %vm1730_vm0, %v1731_v1 }
 0x1e4   : > { %v743_v17 = vpop.permute.xlu1 %742  ;;  %1360 = vmatprep.subr.mxu0 %v1731_v1 }
 0x1e6   : > { %1353 = vmatmul.mubr.msk.f32.vlgmr.msra.gmra.mrb[2].mxu0 %vm409_vm2, %v574_v15  ;;  %v741_v18 = vpop.permute.xlu0 %740 }
 0x1e7   : > { %1361 = vmatpush3.xpose.msk.msra.mxu0 %vm409_vm2, %v743_v17  ;;  %1362 = vmatprep.mubr.msk.f32.mxu0 %vm1730_vm0, %v1731_v1 }
 0x1e8   : > { %1370 = vmatprep.subr.mxu0 %v1731_v1  ;;  %v910_v19 = vpop.permute.xlu1 %909 }
 0x1ea   : > { %1363 = vmatmul.mubr.msk.f32.vlgmr.msra.gmra.mrb[4].mxu0 %vm409_vm2, %v741_v18  ;;  %v908_v20 = vpop.permute.xlu0 %907 }
 0x1eb   : > { %1371 = vmatpush3.xpose.msk.msra.mxu0 %vm409_vm2, %v910_v19  ;;  %1372 = vmatprep.mubr.msk.f32.mxu0 %vm1730_vm0, %v1731_v1 }
 0x1ee   : > { %1373 = vmatmul.mubr.msk.f32.vlgmr.msra.gmra.mrb[6].mxu0 %vm409_vm2, %v908_v20 }
 0x2b5   : > { %v481_v22 = vpop.f32.mrb[0].mxu1 }
 0x2b6   : > { %v482_v23 = vadd.f32 %v1284_v21, %v481_v22  ;;  %v1344_v24 = vpop.f32.mrb[1].mxu1 }
 0x2b8   : > { %v485_v25 = vsel %vm409_vm2, %v482_v23, -inf }
 0x2b9   : > { %486 = vmax.xlane.f32.xlu1 %v485_v25  ;;  %v647_v26 = vpop.f32.mrb[2].mxu0 }
 0x2ba   : > { %v648_v27 = vadd.f32 %v1284_v21, %v647_v26  ;;  %v1354_v28 = vpop.f32.mrb[3].mxu0 }
 0x2bc   : > { %v651_v29 = vsel %vm409_vm2, %v648_v27, -inf }
 0x2bd   : > { %652 = vmax.xlane.f32.xlu0 %v651_v29  ;;  %v814_v30 = vpop.f32.mrb[4].mxu0 }
 0x2be   : > { %v815_v31 = vadd.f32 %v1284_v21, %v814_v30  ;;  %v1364_v32 = vpop.f32.mrb[5].mxu0 }
 0x2c0   : > { %v818_v33 = vsel %vm409_vm2, %v815_v31, -inf }
 0x2c1   : > { %819 = vmax.xlane.f32.xlu0 %v818_v33  ;;  %v981_v34 = vpop.f32.mrb[6].mxu0 }
 0x2c2   : > { %v982_v35 = vadd.f32 %v1284_v21, %v981_v34  ;;  %v1374_v36 = vpop.f32.mrb[7].mxu0 }
 0x2c4   : > { %v985_v37 = vsel %vm409_vm2, %v982_v35, -inf }
 0x2c5   : > { %986 = vmax.xlane.f32.xlu1 %v985_v37 }
 0x2d6   : > { %664 = vrot.lane.b32.xlu1 %v2011_v11, %s1739_s14  ;;  %s1744_s14 = smov [#allocation11]  }
 0x346   : > { %v487_v38 = vpop.xlane.xlu1 %486 }
 0x347   : > { %v488_v39 = vsub.f32 %v482_v23, %v487_v38 }
 0x349   : > { %v489_v40 = vmul.f32 1.442695, %v488_v39 }
 0x34a   : > { %v653_v41 = vpop.xlane.xlu0 %652 }
 0x34b   : > { %1483 = vpow2.f32 %v489_v40  ;;  %v654_v42 = vsub.f32 %v648_v27, %v653_v41 }
 0x34d   : > { %v655_v43 = vmul.f32 1.442695, %v654_v42 }
 0x34e   : > { %v820_v53 = vpop.xlane.xlu0 %819 }
 0x34f   : > { %1485 = vpow2.f32 %v655_v43  ;;  %v821_v54 = vsub.f32 %v815_v31, %v820_v53 }
 0x351   : > { %v822_v55 = vmul.f32 1.442695, %v821_v54 }
 0x352   : > { %v987_v44 = vpop.xlane.xlu1 %986 }
 0x353   : > { %v988_v45 = vsub.f32 %v982_v35, %v987_v44 }
 0x355   : > { %v1484_v46 = vpop.eup %1483  ;;  %v989_v47 = vmul.f32 1.442695, %v988_v45 }
 0x356   : > { %v491_v48 = vsel %vm409_vm2, %v1484_v46, 0.0  ;;  %v665_v58 = vpop.permute.xlu1 %664 }
 0x357   : > { %1487 = vpow2.f32 %v989_v47  ;;  %492 = vadd.xlane.f32.xlu0 %v491_v48 }
 0x358   : > { %1489 = vpow2.f32 %v822_v55 }
 0x359   : > { %v1486_v49 = vpop.eup %1485 }
 0x35a   : > { %v657_v50 = vsel %vm409_vm2, %v1486_v49, 0.0 }
 0x35b   : > { %658 = vadd.xlane.f32.xlu1 %v657_v50 }
 0x361   : > { %v1488_v51 = vpop.eup %1487 }
 0x362   : > { %v991_v52 = vsel %vm409_vm2, %v1488_v51, 0.0  ;;  %v1490_v56 = vpop.eup %1489 }
 0x363   : > { %992 = vadd.xlane.f32.xlu1 %v991_v52  ;;  %v824_v57 = vsel %vm409_vm2, %v1490_v56, 0.0 }
 0x36d   : > { %497 = vrot.lane.b32.xlu0 %v2011_v11, %s1740_s6  ;;  %s1619_s6 = sshll.u32 %s1744_s14, 4  ;;  %s1620_s6 = int_to_ptr.vmem [resolvable:$false] %s1619_s6 }
 0x36e   : > { %p1622_p6 = scmp.lt.s32.totalorder %s2081_s30, %s1620_s6 }
 0x374   : > { %831 = vrot.lane.b32.xlu1 %v2011_v11, %s1741_s7  ;;  %s1621_s7 = scalar_lea.vmem %s1620_s6, 1024 }
 0x375   : > { %p1623_p10 = scmp.lt.s32.totalorder %s1621_s7, %s1615_s27 }
 0x377   : > { %p1624_p4 = por %p1623_p10, %p1622_p6 }
 0x379   : > { %p1625_p5 = pnand %p1624_p4, %p1618_p13 }
 0x38c   : > { %825 = vadd.xlane.f32.xlu0 %v824_v57 }
 0x3a2   : > { %998 = vrot.lane.b32.xlu0 %v2011_v11, %s1742_s11 }
 0x3e4   : > { %v493_v59 = vpop.xlane.xlu0 %492 }
 0x3e5   : > { %1491 = vrcp.f32 %v493_v59 }
 0x3e8   : > { %v498_v60 = vpop.permute.xlu0 %497  ;;  %v659_v61 = vpop.xlane.xlu1 %658 }
 0x3e9   : > { %1493 = vrcp.f32 %v659_v61  ;;  %1346 = vmatpush3.msra.mxu1 %v498_v60 }
 0x3ea   : > { %1355 = vmatprep.subr.mxu1 %v1731_v1 }
 0x3ef   : > { %v1492_v62 = vpop.eup %1491 }
 0x3f0   : > { %v495_v63 = vmul.f32 %v1492_v62, %v1484_v46  ;;  %v993_v0 = vpop.xlane.xlu1 %992 }
 0x3f1   : > { %1495 = vrcp.f32 %v993_v0 }
 0x3f2   : > { %496 = vst.msk [vmem:[%s2051_s26] sm:$0xff] %vm409_vm2, %v495_v63  ;;  %1348 = vmatmul.mubr.msk.f32.vlgmr.msra.gmra.mrb[2].mxu1 %vm409_vm2, %v495_v63 }
 0x3f3   : > { %v1494_v2 = vpop.eup %1493  ;;  %1356 = vmatpush3.msra.mxu1 %v665_v58  ;;  %1357 = vmatprep.mubr.msk.f32.mxu1 %vm1730_vm0, %v1731_v1 }
 0x3f4   : > { %v661_v3 = vmul.f32 %v1494_v2, %v1486_v49  ;;  %v832_v4 = vpop.permute.xlu1 %831  ;;  %1365 = vmatprep.subr.mxu1 %v1731_v1 }
 0x3f6   : > { %1290 = vst.msk [vmem:[%s2051_s26 + $0x8] sm:$0xff] %vm409_vm2, %v661_v3  ;;  %1358 = vmatmul.mubr.msk.f32.vlgmr.msra.gmra.mrb[4].mxu1 %vm409_vm2, %v661_v3 }
 0x3f7   : > { %1366 = vmatpush3.msra.mxu1 %v832_v4  ;;  %1367 = vmatprep.mubr.msk.f32.mxu1 %vm1730_vm0, %v1731_v1 }
 0x3f8   : > { %1375 = vmatprep.subr.mxu1 %v1731_v1 }
 0x3fb   : > { %v1496_v5 = vpop.eup %1495 }
 0x3fc   : > { %v995_v6 = vmul.f32 %v1496_v5, %v1488_v51 }
 0x3fe   : > { %1298 = vst.msk [vmem:[%s2051_s26 + $0x18] sm:$0xff] %vm409_vm2, %v995_v6 }
 0x419   : > { %v826_v7 = vpop.xlane.xlu0 %825 }
 0x41a   : > { %1497 = vrcp.f32 %v826_v7 }
 0x41d   : > { %v999_v10 = vpop.permute.xlu0 %998 }
 0x424   : > { %v1498_v8 = vpop.eup %1497 }
 0x425   : > { %v828_v9 = vmul.f32 %v1498_v8, %v1490_v56 }
 0x427   : > { %1294 = vst.msk [vmem:[%s2051_s26 + $0x10] sm:$0xff] %vm409_vm2, %v828_v9  ;;  %1368 = vmatmul.mubr.msk.f32.vlgmr.msra.gmra.mrb[6].mxu1 %vm409_vm2, %v828_v9 }
 0x428   : > { %1376 = vmatpush3.msra.mxu1 %v999_v10  ;;  %1377 = vmatprep.mubr.msk.f32.mxu1 %vm1730_vm0, %v1731_v1 }
 0x42b   : > { %1378 = vmatmul.mubr.msk.f32.vlgmr.msra.gmra.mrb[8].mxu1 %vm409_vm2, %v995_v6 }
 0x4c5   : > { %v569_v11 = vpop.f32.mrb[2].mxu1 }
 0x4c6   : > { %v1349_v12 = vpop.f32.mrb[3].mxu1 }
 0x4c9   : > { %v736_v13 = vpop.f32.mrb[4].mxu1 }
 0x4ca   : > { %1075 = vrot.lane.b32.xlu1 %v736_v13, %s1743_s28  ;;  %v1359_v14 = vpop.f32.mrb[5].mxu1 }
 0x4cb   : > { %1628 = shalt.err (!%p1625_p5)
}
 0x4cc   : > { %s1629_s11 = scalar_lea.hbm %s2079_s12, 512  ;;  %s1633_s24 = scalar_lea.hbm %s2165_s5, 1024 }
 0x4cd   : > { %p1630_p3 = scmp.ne.s32.totalorder %s2079_s12, %s1629_s11  ;;  %p1634_p8 = scmp.lt.u32.totalorder %s2079_s12, %s2165_s5 }
 0x4ce   : > { %p1635_p11 = scmp.lt.u32.totalorder %s1633_s24, %s1629_s11  ;;  %p1637_p9 = scmp.lt.u32.totalorder %s1629_s11, %s2079_s12 }
 0x4cf   : > { %p1631_p7 = pnand %p1630_p3, %p2181_p12 }
 0x4d0   : > { %p1636_p0 = por %p1635_p11, %p1634_p8 }
 0x4d1   : > { %p1632_p1 = pneg %p1631_p7 }
 0x4d2   : > { %p1638_p2 = por %p1637_p9, %p1636_p0 }
 0x4d4   : > { %p1639_p13 = pnand %p1638_p2, %p1632_p1 }
 0x4d6   : > { %1642 = shalt.err (!%p1639_p13)
}
 0x4d7   : > { %s1745_s27 = smov 128   ;;  %s1746_s14 = smov 16   ;;  %vm1087_vm3 = vcmask 130048   ;;  %vm1089_vm4 = vcmask 195584  }
 0x4d8   : > { %1399 = dma.vmem_to_hbm [thread:$0]  (%p2181_p12), %s2081_s30, 512, %s2079_s12, %s1098_s16, %s1745_s27, %s1745_s27, %s1743_s28  }
 0x4d9   : > { %s1747_s6 = smov 24   ;;  %s1302_s7 = sshll.u32 %s1800_s22, 7 }
 0x4da   : > { %s304_s11 = scalar_lea.vmem [#allocation10], %s1277_s9  ;;  %s2115_s12 = scalar_lea.hbm %s2164_s4, %s1302_s7 }
 0x4db   : > { %s1111_s13 = sshll.u32 %s304_s11, 4  ;;  %s1093_s22 = scalar_lea.sflag [#allocation4], %s1982_s29  ;;  %s2117_s13 = int_to_ptr.vmem [resolvable:$true] %s1111_s13 }
 0x4dc   : > { %s1643_s9 = scalar_lea.vmem %s2117_s13, 128  ;;  %s1748_s16 = smov [#allocation10]  }
 0x4dd   : > { %p1644_p6 = scmp.ne.s32.totalorder %s2117_s13, %s1643_s9  ;;  %s1647_s26 = sshll.u32 %s1748_s16, 4  ;;  %s1648_s26 = int_to_ptr.vmem [resolvable:$false] %s1647_s26 }
 0x4de   : > { %s1649_s24 = scalar_lea.vmem %s1648_s26, 256  ;;  %p1650_p5 = scmp.lt.s32.totalorder %s2117_s13, %s1648_s26 }
 0x4df   : > { %p1645_p10 = pnand %p1644_p6, %p2181_p12  ;;  %p1651_p3 = scmp.lt.s32.totalorder %s1649_s24, %s1643_s9 }
 0x4e1   : > { %p1646_p4 = pneg %p1645_p10  ;;  %p1652_p7 = por %p1651_p3, %p1650_p5 }
 0x4e3   : > { %p1653_p1 = pnand %p1652_p7, %p1646_p4 }
 0x4fa   : > { %v903_v1 = vpop.f32.mrb[6].mxu1 }
 0x4fb   : > { %1079 = vrot.lane.b32.xlu0 %v903_v1, %s1746_s14  ;;  %v1369_v15 = vpop.f32.mrb[7].mxu1 }
 0x4fe   : > { %v1070_v16 = vpop.f32.mrb[8].mxu1 }
 0x4ff   : > { %1083 = vrot.lane.b32.xlu1 %v1070_v16, %s1747_s6  ;;  %v1379_v17 = vpop.f32.mrb[9].mxu1 }
 0x53c   : > { %v1076_v18 = vpop.permute.xlu1 %1075 }
 0x53d   : > { %v1086_v20 = vsel %vm409_vm2, %v569_v11, %v1076_v18 }
 0x56d   : > { %v1080_v19 = vpop.permute.xlu0 %1079 }
 0x56e   : > { %v1088_v21 = vsel %vm1087_vm3, %v1086_v20, %v1080_v19 }
 0x571   : > { %v1084_v22 = vpop.permute.xlu1 %1083 }
 0x572   : > { %v1090_v23 = vsel %vm1089_vm4, %v1088_v21, %v1084_v22 }
 0x573   : > { %1091 = vst.msk [vmem:[%s304_s11] sm:$0xff] %vm324_vm1, %v1090_v23 }
 0x574   : > { %1656 = shalt.err (!%p1653_p1)
}
 0x575   : > { %s1657_s29 = scalar_lea.hbm %s2115_s12, 128  ;;  %s1661_s27 = scalar_lea.hbm %s2164_s4, 256 }
 0x576   : > { %p1658_p8 = scmp.ne.s32.totalorder %s2115_s12, %s1657_s29  ;;  %p1662_p9 = scmp.lt.u32.totalorder %s2115_s12, %s2164_s4 }
 0x577   : > { %p1663_p2 = scmp.lt.u32.totalorder %s1661_s27, %s1657_s29  ;;  %p1665_p6 = scmp.lt.u32.totalorder %s1657_s29, %s2115_s12 }
 0x578   : > { %p1659_p11 = pnand %p1658_p8, %p2181_p12 }
 0x579   : > { %p1664_p13 = por %p1663_p2, %p1662_p9 }
 0x57a   : > { %p1660_p0 = pneg %p1659_p11 }
 0x57b   : > { %p1666_p10 = por %p1665_p6, %p1664_p13 }
 0x57d   : > { %p1667_p4 = pnand %p1666_p10, %p1660_p0 }
 0x57f   : > { %1670 = shalt.err (!%p1667_p4)
}
 0x580   : > { %1398 = dma.vmem_to_hbm [thread:$0]  (%p2181_p12), %s2117_s13, 128, %s2115_s12, %s1093_s22  }
 0x581 PF: > { %s1139_s7 = sand.u32 1, %s1709_s18   ;;  %p2182_p5 = scmp.ne.s32.totalorder %s2171_s25, 0 }
 0x582   : > { %p2183_p3 = scmp.ge.s32.totalorder %s1721_s21, 2  ;;  %s1140_s11 = scalar_lea.sflag [#allocation4], %s1139_s7 }
 0x584   : > { %p1417_p7 = pnand %p2183_p3, %p2182_p5 }
 0x586   : > { %1700 = dma.done.wait (!%p1417_p7), %s1140_s11, 128  }
 0x587   : > { %1702 = vsyncadd (!%p1417_p7), %s1140_s11, 4294967168  ;;  %s1149_s28 = scalar_lea.sflag [#allocation12], %s1139_s7 }
 0x588   : > { %1704 = dma.done.wait (!%p1417_p7), %s1149_s28, 512  }
 0x589   : > { %1706 = vsyncadd (!%p1417_p7), %s1149_s28, 4294966784  ;;  %p26_p12 = scmp.ge.s32.totalorder %s1890_s15, 4   ;;  %s2184_s18 = smov %s1713_s19 }
 0x58a   : > { %s2185_s19 = smov %s1717_s20  ;;  %s2186_s20 = smov %s1906_s23 }
 0x58b   : > { %s2187_s21 = smov %s1890_s15  ;;  %28 = sbr.rel (!%p26_p12) target bundleno = 10 (0xa), region = 122 }
 0x592   :  { %1154 = vsyncpa [#allocation3], 1 }
 0x593   :  { %1156 = vsyncpa [#allocation3 + $0x1], 1 }
 0x594   :  { %1157 = vsyncpa [#allocation6], 1 }
 0x595   :  { %1158 = vsyncpa [#allocation9], 1 }
 0x596   :  { %1160 = vsyncpa [#allocation9 + $0x1], 1 }
 0x597   :  { %1161 = vsyncpa [#allocation4], 1 }
 0x598   :  { %1163 = vsyncpa [#allocation4 + $0x1], 1 }
 0x599   :  { %1164 = vsyncpa [#allocation12], 1 }
 0x59a   :  { %1166 = vsyncpa [#allocation12 + $0x1], 1 }

</bundles_post_ra>
